<compile_context>
chip_gen: v5e
topology: v5e:2x2
jax: 0.10.0
libtpu: 0.0.40
codegen_flags: <defaults>
</compile_context>

<pallas_src>
import jax
import jax.numpy as jnp
from jax.experimental import pallas as pl
from jax.experimental.pallas import tpu as pltpu


def _round_up(v: int, m: int) -> int:
    return ((v + m - 1) // m) * m


def u_price_kernel(x_ref, a_ref, b_ref, c_ref, o_ref):
    # MXU: (tb, dim) @ (dim, WP) -> (tb, WP), f32 accumulate.
    h = jnp.dot(x_ref[...], a_ref[...], preferred_element_type=jnp.float32)
    # Bias (beta already folded in) + tanh.  f32 epilogue is portable to v5e.
    # Note: on v7x the single EUP tanh slot is the expected roofline once DMA /
    # overhead are amortized; a bf16 tanh or a VPU polynomial approximation is
    # the next lever if profiling shows the EUP slot saturating.
    h = jnp.tanh(h - b_ref[...])
    # Lane-dense epilogue: (1, WP) @ (WP, tb) -> (1, tb).  Batch lands on the
    # lane axis so the output block store / writeback DMA is contiguous and
    # unmasked.  Zero-padded c lanes contribute nothing.
    o_ref[...] = jnp.dot(c_ref[...], h.T, preferred_element_type=jnp.float32)


def u_price_forward(x, beta, a, b, c, *, block_b=8192, matmul_dtype=None):
    """u = tanh((x - beta) @ a - b) @ c.

    x: (B, dim); beta: (dim,); a: (dim, width); b, c: (width,).  Returns (B,) f32.
    matmul_dtype: dtype used for x and a in the MXU matmul (e.g. jnp.bfloat16 to
    halve x HBM traffic).  Accumulation and the bias/tanh/c epilogue are f32.
    """
    B, dim = x.shape
    width = a.shape[1]
    WP = _round_up(width, 128)            # pad width to a lane multiple (free)
    hp = jax.lax.Precision.HIGHEST

    a32 = a.astype(jnp.float32)
    # Fold beta into the bias:  (x - beta) @ a - b  ==  x @ a - (b + beta @ a)
    b_eff = (b.astype(jnp.float32)
             + jnp.dot(beta.astype(jnp.float32), a32, precision=hp)).reshape(1, width)
    c_row = c.astype(jnp.float32).reshape(1, width)

    # Zero-pad the width axis to WP lanes (tiny weight arrays; padded columns
    # are killed by the zero c entries).
    a_p = jnp.pad(a32, ((0, 0), (0, WP - width)))
    b_p = jnp.pad(b_eff, ((0, 0), (0, WP - width)))
    c_p = jnp.pad(c_row, ((0, 0), (0, WP - width)))

    if matmul_dtype is None:
        matmul_dtype = x.dtype
    matmul_dtype = jnp.dtype(matmul_dtype)
    if x.dtype != matmul_dtype:
        # NOTE: ideally the caller supplies x already in matmul_dtype so this
        # cast (an extra pass over x in HBM) is avoided.
        x = x.astype(matmul_dtype)
    a_p = a_p.astype(matmul_dtype)

    # Batch tiling.  Small batches: one full-batch tile (block == array, legal
    # for any B).  Larger batches: 128-aligned tiles, capped at block_b, with at
    # least 2 grid steps so v7x's two TensorCores both get work.  The last block
    # may be ragged (no pre-pad of x); its out-of-bounds lanes are masked.
    if B <= 256:
        tb = B
    else:
        tb = min(_round_up(block_b, 128), _round_up(pl.cdiv(B, 2), 128))
    grid = (pl.cdiv(B, tb),)

    itemsize = jnp.dtype(matmul_dtype).itemsize
    cost = pl.CostEstimate(
        flops=int(2 * B * dim * width + 2 * B * width),
        transcendentals=int(B * width),
        bytes_accessed=int(B * dim * itemsize + B * 4
                           + dim * WP * itemsize + 2 * WP * 4),
    )

    out = pl.pallas_call(
        u_price_kernel,
        out_shape=jax.ShapeDtypeStruct((1, B), jnp.float32),
        grid=grid,
        in_specs=[
            pl.BlockSpec((tb, dim), lambda i: (i, 0)),   # x: tiled + pipelined
            pl.BlockSpec((dim, WP), lambda i: (0, 0)),   # a: VMEM-resident
            pl.BlockSpec((1, WP), lambda i: (0, 0)),     # b_eff: VMEM-resident
            pl.BlockSpec((1, WP), lambda i: (0, 0)),     # c: VMEM-resident
        ],
        out_specs=pl.BlockSpec((1, tb), lambda i: (0, i)),  # lane-dense output
        compiler_params=pltpu.CompilerParams(
            dimension_semantics=("parallel",),
            vmem_limit_bytes=32 * 1024 * 1024,
        ),
        cost_estimate=cost,
    )(x, a_p, b_p, c_p)
    return out[0]


def reference_forward(x, beta, a, b, c):
    hp = jax.lax.Precision.HIGHEST
    h = jnp.tanh(jnp.dot(x - beta[None, :], a, precision=hp) - b[None, :])
    return jnp.dot(h, c, precision=hp)


if __name__ == "__main__":
    dim, width = 10, 80

    key = jax.random.PRNGKey(0)
    k_beta, k_a, k_b, k_c, k_x1, k_x2 = jax.random.split(key, 6)

    beta = jax.random.normal(k_beta, (dim,), dtype=jnp.float32)
    a = jax.random.normal(k_a, (dim, width), dtype=jnp.float32)
    b = jax.random.normal(k_b, (width,), dtype=jnp.float32)
    c = jax.random.normal(k_c, (width,), dtype=jnp.float32)

    # 1) Single full-batch tile path (B <= 256), exact f32 compute.
    x1 = jax.random.normal(k_x1, (128, dim), dtype=jnp.float32)
    u1 = u_price_forward(x1, beta, a, b, c)
    jax.block_until_ready(u1)
    r1 = reference_forward(x1, beta, a, b, c)
    assert u1.shape == (128,)
    assert jnp.allclose(u1, r1, atol=1e-3, rtol=1e-3), float(jnp.max(jnp.abs(u1 - r1)))

    # 2) Multi-tile path: 2 grid steps (v7x megacore), ragged last block
    #    (no pad copy of x), lane-dense (1, tb) output blocks.
    x2 = jax.random.normal(k_x2, (300, dim), dtype=jnp.float32)
    u2 = u_price_forward(x2, beta, a, b, c)
    jax.block_until_ready(u2)
    r2 = reference_forward(x2, beta, a, b, c)
    assert u2.shape == (300,)
    assert jnp.allclose(u2, r2, atol=1e-3, rtol=1e-3), float(jnp.max(jnp.abs(u2 - r2)))

    # 3) bf16 matmul-input option (halves x HBM traffic); f32 accumulate/epilogue.
    #    Loose tolerance: bf16 inputs are an explicit accuracy/bandwidth tradeoff.
    u3 = u_price_forward(x2, beta, a, b, c, matmul_dtype=jnp.bfloat16)
    jax.block_until_ready(u3)
    assert u3.shape == (300,)
    assert jnp.allclose(u3, r2, atol=0.5, rtol=0.1), float(jnp.max(jnp.abs(u3 - r2)))

    print("KERNEL_OK")
</pallas_src>

<mosaic_0001>
module attributes {stable_mosaic.version = 11 : i64} {
  func.func @u_price_kernel(%arg0: i32, %arg1: memref<128x10xf32, #tpu.memory_space<vmem>>, %arg2: memref<10x128xf32, #tpu.memory_space<vmem>>, %arg3: memref<1x128xf32, #tpu.memory_space<vmem>>, %arg4: memref<1x128xf32, #tpu.memory_space<vmem>>, %arg5: memref<1x128xf32, #tpu.memory_space<vmem>>) attributes {dimension_semantics = [#tpu.dimension_semantics<parallel>], iteration_bounds = array<i64: 1>, scalar_prefetch = 0 : i64, scratch_operands = 0 : i64, tpu.core_type = #tpu.core_type<tc>, window_params = [{transform_indices = @transform_0, window_bounds = array<i64: 128, 10>}, {pipeline_mode = #tpu.pipeline_mode<synchronous>, transform_indices = @transform_1, window_bounds = array<i64: 10, 128>}, {pipeline_mode = #tpu.pipeline_mode<synchronous>, transform_indices = @transform_2, window_bounds = array<i64: 1, 128>}, {pipeline_mode = #tpu.pipeline_mode<synchronous>, transform_indices = @transform_3, window_bounds = array<i64: 1, 128>}, {transform_indices = @transform_4, window_bounds = array<i64: 1, 128>}]} {
    %c0 = arith.constant 0 : index
    %c0_0 = arith.constant 0 : index
    %0 = vector.load %arg1[%c0, %c0_0] : memref<128x10xf32, #tpu.memory_space<vmem>>, vector<128x10xf32>
    %c0_1 = arith.constant 0 : index
    %c0_2 = arith.constant 0 : index
    %1 = vector.load %arg2[%c0_1, %c0_2] : memref<10x128xf32, #tpu.memory_space<vmem>>, vector<10x128xf32>
    %cst = arith.constant dense<0.000000e+00> : vector<128x128xf32>
    %2 = tpu.matmul %0, %1, %cst {dimension_numbers = #tpu.dot_dimension_numbers<[1], [0], [0], [1], [0, 0, 1, 1], [], []>} : vector<128x10xf32>, vector<10x128xf32>, vector<128x128xf32> -> vector<128x128xf32>
    %c0_3 = arith.constant 0 : index
    %c0_4 = arith.constant 0 : index
    %3 = vector.load %arg3[%c0_3, %c0_4] : memref<1x128xf32, #tpu.memory_space<vmem>>, vector<1x128xf32>
    %4 = vector.broadcast %3 : vector<1x128xf32> to vector<128x128xf32>
    %5 = arith.subf %2, %4 : vector<128x128xf32>
    %6 = math.tanh %5 : vector<128x128xf32>
    %c0_5 = arith.constant 0 : index
    %c0_6 = arith.constant 0 : index
    %7 = vector.load %arg4[%c0_5, %c0_6] : memref<1x128xf32, #tpu.memory_space<vmem>>, vector<1x128xf32>
    %8 = tpu.transpose %6, [1, 0] : vector<128x128xf32> -> vector<128x128xf32>
    %cst_7 = arith.constant dense<0.000000e+00> : vector<1x128xf32>
    %9 = tpu.matmul %7, %8, %cst_7 {dimension_numbers = #tpu.dot_dimension_numbers<[1], [0], [0], [1], [0, 0, 1, 1], [], []>} : vector<1x128xf32>, vector<128x128xf32>, vector<1x128xf32> -> vector<1x128xf32>
    %c0_8 = arith.constant 0 : index
    %c0_9 = arith.constant 0 : index
    %10 = vector.load %arg5[%c0_8, %c0_9] : memref<1x128xf32, #tpu.memory_space<vmem>>, vector<1x128xf32>
    tpu.vector_store %arg5[%c0_8, %c0_9], %9 {strides = array<i32>} : memref<1x128xf32, #tpu.memory_space<vmem>>, vector<1x128xf32>,
    return
  }
  func.func @transform_0(%arg0: i32) -> (i32, i32) {
    %c0_i32 = arith.constant 0 : i32
    %c0_i32_0 = arith.constant 0 : i32
    return %arg0, %c0_i32 : i32, i32
  }
  func.func @transform_1(%arg0: i32) -> (i32, i32) {
    %c0_i32 = arith.constant 0 : i32
    %c0_i32_0 = arith.constant 0 : i32
    %c0_i32_1 = arith.constant 0 : i32
    return %c0_i32, %c0_i32_0 : i32, i32
  }
  func.func @transform_2(%arg0: i32) -> (i32, i32) {
    %c0_i32 = arith.constant 0 : i32
    %c0_i32_0 = arith.constant 0 : i32
    %c0_i32_1 = arith.constant 0 : i32
    return %c0_i32, %c0_i32_0 : i32, i32
  }
  func.func @transform_3(%arg0: i32) -> (i32, i32) {
    %c0_i32 = arith.constant 0 : i32
    %c0_i32_0 = arith.constant 0 : i32
    %c0_i32_1 = arith.constant 0 : i32
    return %c0_i32, %c0_i32_0 : i32, i32
  }
  func.func @transform_4(%arg0: i32) -> (i32, i32) {
    %c0_i32 = arith.constant 0 : i32
    %c0_i32_0 = arith.constant 0 : i32
    return %c0_i32, %arg0 : i32, i32
  }
}

</mosaic_0001>

<bundles_post_ra>
// kernel: tpu_custom_call.1
= control target key start
LH: loop header
LB: loop body
LE: loop exit
PB: predicated region body
PF: predicated region fallthrough
CT: control target
= control target key end

     0   :  { %vm85_vm0 = vcmask 1041408   ;;  %vm36_vm1 = vcmask 80896   ;;  %s435_s0 = inlined_call_operand.vmem [shape: f32[128,10], index: 0, kind: input, shape index: {}]   ;;  %s436_s1 = inlined_call_operand.vmem [shape: f32[10,128], index: 1, kind: input, shape index: {}]   ;;  %s437_s2 = inlined_call_operand.vmem [shape: f32[1,128], index: 2, kind: input, shape index: {}]   ;;  %s438_s3 = inlined_call_operand.vmem [shape: f32[1,128], index: 3, kind: input, shape index: {}]   ;;  %s439_s4 = inlined_call_operand.hbm [shape: f32[1,128], index: 4, kind: output, shape index: {}]  }
   0x1   :  { %v35_v0 = vld [vmem:[%s436_s1 + $0x8] sm:$0x3]  ;;  %v34_v1 = vld [vmem:[%s436_s1] sm:$0xff]  ;;  %v24_v2 = vld [vmem:[%s435_s0 + $0x30] sm:$0xff] }
   0x2   :  { %245 = vmatpush.msk.msra.mxu2 %vm85_vm0, %v35_v0  ;;  %246 = vmatpush.msk.msra.mxu3 %vm85_vm0, %v35_v0  ;;  %v31_v3 = vld [vmem:[%s435_s0 + $0x68] sm:$0xff] }
   0x3   :  { %228 = vmatpush.msk.msra.mxu0 %vm85_vm0, %v35_v0 }
   0x4   :  { %247 = vmatpush.msra.mxu2 %v34_v1  ;;  %248 = vmatpush.msra.mxu3 %v34_v1 }
   0x5   :  { %9 = vsyncpa [#allocation3], 0  ;;  %235 = vmatmul.msk.f32.vlgmr.msra.gmra.mxu2 %vm36_vm1, %v24_v2  ;;  %242 = vmatmul.msk.f32.vlgmr.msra.gmra.mxu3 %vm36_vm1, %v31_v3  ;;  %v25_v4 = vld [vmem:[%s435_s0 + $0x38] sm:$0xff]  ;;  %v32_v5 = vld [vmem:[%s435_s0 + $0x70] sm:$0xff]  ;;  %s309_s25 = smov [#allocation2]   ;;  %s219_s29 = sshll.u32 %s439_s4, 4  ;;  %s220_s29 = int_to_ptr.hbm [resolvable:$true] %s219_s29 }
   0x6   :  { %104 = vmatpush.msra.mxu0 %v34_v1  ;;  %v18_v6 = vld [vmem:[%s435_s0] sm:$0xff]  ;;  %v33_v8 = vld [vmem:[%s435_s0 + $0x78] sm:$0xff]  ;;  %v19_v9 = vld [vmem:[%s435_s0 + $0x8] sm:$0xff]  ;;  %s217_s26 = sshll.u32 %s309_s25, 4  ;;  %s218_s26 = int_to_ptr.vmem [resolvable:$true] %s217_s26 }
   0x7   :  { %229 = vmatmul.msk.f32.vlgmr.msra.gmra.mxu0 %vm36_vm1, %v18_v6  ;;  %v26_v7 = vld [vmem:[%s435_s0 + $0x40] sm:$0xff]  ;;  %v27_v10 = vld [vmem:[%s435_s0 + $0x48] sm:$0xff]  ;;  %v20_v11 = vld [vmem:[%s435_s0 + $0x10] sm:$0xff] }
   0x8   :  { %v28_v12 = vld [vmem:[%s435_s0 + $0x50] sm:$0xff]  ;;  %v21_v13 = vld [vmem:[%s435_s0 + $0x18] sm:$0xff]  ;;  %v22_v15 = vld [vmem:[%s435_s0 + $0x20] sm:$0xff] }
   0x9   :  { %v29_v14 = vld [vmem:[%s435_s0 + $0x58] sm:$0xff]  ;;  %v30_v16 = vld [vmem:[%s435_s0 + $0x60] sm:$0xff]  ;;  %v23_v17 = vld [vmem:[%s435_s0 + $0x28] sm:$0xff] }
   0xa   :  { %v408_v22 = vld [vmem:[%s437_s2] ss:$0 sm:$0xff] }
   0xb   :  { %v190_v3 = vld [vmem:[%s438_s3] sm:$0x1] }
   0xd   :  { %236 = vmatmul.msk.f32.gmra.mxu2 %vm36_vm1, %v25_v4  ;;  %243 = vmatmul.msk.f32.gmra.mxu3 %vm36_vm1, %v32_v5 }
   0xf   :  { %230 = vmatmul.msk.f32.gmra.mxu0 %vm36_vm1, %v19_v9 }
  0x15   :  { %237 = vmatmul.msk.f32.gmra.mxu2 %vm36_vm1, %v26_v7  ;;  %244 = vmatmul.msk.f32.gmra.mxu3 %vm36_vm1, %v33_v8 }
  0x17   :  { %231 = vmatmul.msk.f32.gmra.mxu0 %vm36_vm1, %v20_v11 }
  0x1d   :  { %238 = vmatmul.msk.f32.gmra.mxu2 %vm36_vm1, %v27_v10 }
  0x1f   :  { %232 = vmatmul.msk.f32.gmra.mxu0 %vm36_vm1, %v21_v13 }
  0x25   :  { %239 = vmatmul.msk.f32.gmra.mxu2 %vm36_vm1, %v28_v12 }
  0x27   :  { %233 = vmatmul.msk.f32.gmra.mxu0 %vm36_vm1, %v22_v15 }
  0x2d   :  { %240 = vmatmul.msk.f32.gmra.mxu2 %vm36_vm1, %v29_v14 }
  0x2f   :  { %234 = vmatmul.msk.f32.gmra.mxu0 %vm36_vm1, %v23_v17 }
  0x35   :  { %241 = vmatmul.msk.f32.gmra.mxu2 %vm36_vm1, %v30_v16 }
  0x84   :  { %v412_v27 = vpop.f32.mrf.mxu0 }
  0x85   :  { %v158_v63 = vsub.f32 %v412_v27, %v408_v22 }
  0x88   :  { %v124_v18 = vpop.f32.mrf.mxu2  ;;  %v145_v19 = vpop.f32.mrf.mxu3 }
  0x89   :  { %v171_v28 = vsub.f32 %v145_v19, %v408_v22  ;;  %v164_v51 = vsub.f32 %v124_v18, %v408_v22 }
  0x8c   :  { %v109_v32 = vpop.f32.mrf.mxu0 }
  0x8d   :  { %v159_v61 = vsub.f32 %v109_v32, %v408_v22 }
  0x90   :  { %v127_v20 = vpop.f32.mrf.mxu2  ;;  %v148_v21 = vpop.f32.mrf.mxu3 }
  0x91   :  { %v172_v26 = vsub.f32 %v148_v21, %v408_v22  ;;  %v165_v48 = vsub.f32 %v127_v20, %v408_v22 }
  0x94   :  { %v112_v36 = vpop.f32.mrf.mxu0 }
  0x95   :  { %v160_v59 = vsub.f32 %v112_v36, %v408_v22 }
  0x98   :  { %v130_v23 = vpop.f32.mrf.mxu2  ;;  %v151_v24 = vpop.f32.mrf.mxu3 }
  0x99   :  { %v173_v25 = vsub.f32 %v151_v24, %v408_v22  ;;  %v166_v46 = vsub.f32 %v130_v23, %v408_v22 }
  0x9b   :  { %251 = vtanh.f32 %v173_v25 }
  0x9c   :  { %253 = vtanh.f32 %v172_v26  ;;  %v115_v39 = vpop.f32.mrf.mxu0 }
  0x9d   :  { %255 = vtanh.f32 %v171_v28  ;;  %v161_v58 = vsub.f32 %v115_v39, %v408_v22 }
  0xa0   :  { %v133_v29 = vpop.f32.mrf.mxu2 }
  0xa1   :  { %v252_v30 = vpop.eup %251  ;;  %v167_v43 = vsub.f32 %v133_v29, %v408_v22 }
  0xa2   :  { %191 = vmatpush.xpose.msra.mxu1 %v252_v30  ;;  %v254_v31 = vpop.eup %253 }
  0xa3   :  { %v256_v34 = vpop.eup %255 }
  0xa4   :  { %v118_v44 = vpop.f32.mrf.mxu0 }
  0xa5   :  { %v162_v55 = vsub.f32 %v118_v44, %v408_v22 }
  0xa6   :  { %192 = vmatpush.xpose.msra.mxu1 %v254_v31 }
  0xa8   :  { %v136_v33 = vpop.f32.mrf.mxu2 }
  0xa9   :  { %v168_v41 = vsub.f32 %v136_v33, %v408_v22 }
  0xaa   :  { %193 = vmatpush.xpose.msra.mxu1 %v256_v34 }
  0xac   :  { %v121_v50 = vpop.f32.mrf.mxu0 }
  0xad   :  { %v163_v53 = vsub.f32 %v121_v50, %v408_v22 }
  0xb0   :  { %v139_v35 = vpop.f32.mrf.mxu2 }
  0xb1   :  { %v169_v40 = vsub.f32 %v139_v35, %v408_v22 }
  0xb8   :  { %v142_v37 = vpop.f32.mrf.mxu2 }
  0xb9   :  { %v170_v38 = vsub.f32 %v142_v37, %v408_v22 }
  0xbb   :  { %257 = vtanh.f32 %v170_v38 }
  0xbc   :  { %259 = vtanh.f32 %v169_v40 }
  0xbd   :  { %261 = vtanh.f32 %v168_v41 }
  0xbe   :  { %263 = vtanh.f32 %v167_v43 }
  0xbf   :  { %265 = vtanh.f32 %v166_v46 }
  0xc0   :  { %267 = vtanh.f32 %v165_v48 }
  0xc1   :  { %v258_v42 = vpop.eup %257  ;;  %269 = vtanh.f32 %v164_v51 }
  0xc2   :  { %194 = vmatpush.xpose.msra.mxu1 %v258_v42  ;;  %v260_v45 = vpop.eup %259  ;;  %271 = vtanh.f32 %v163_v53 }
  0xc3   :  { %v262_v47 = vpop.eup %261  ;;  %273 = vtanh.f32 %v162_v55 }
  0xc4   :  { %v264_v49 = vpop.eup %263  ;;  %275 = vtanh.f32 %v161_v58 }
  0xc5   :  { %v266_v52 = vpop.eup %265  ;;  %277 = vtanh.f32 %v160_v59 }
  0xc6   :  { %195 = vmatpush.xpose.msra.mxu1 %v260_v45  ;;  %v268_v54 = vpop.eup %267  ;;  %279 = vtanh.f32 %v159_v61 }
  0xc7   :  { %v270_v56 = vpop.eup %269  ;;  %281 = vtanh.f32 %v158_v63 }
  0xc8   :  { %v272_v57 = vpop.eup %271 }
  0xc9   :  { %v274_v60 = vpop.eup %273 }
  0xca   :  { %196 = vmatpush.xpose.msra.mxu1 %v262_v47  ;;  %v276_v62 = vpop.eup %275 }
  0xcb   :  { %v278_v0 = vpop.eup %277 }
  0xcc   :  { %v280_v1 = vpop.eup %279 }
  0xcd   :  { %v282_v2 = vpop.eup %281 }
  0xce   :  { %197 = vmatpush.xpose.msra.mxu1 %v264_v49 }
  0xd2   :  { %198 = vmatpush.xpose.msra.mxu1 %v266_v52 }
  0xd6   :  { %199 = vmatpush.xpose.msra.mxu1 %v268_v54 }
  0xda   :  { %200 = vmatpush.xpose.msra.mxu1 %v270_v56 }
  0xde   :  { %201 = vmatpush.xpose.msra.mxu1 %v272_v57 }
  0xe2   :  { %202 = vmatpush.xpose.msra.mxu1 %v274_v60 }
  0xe6   :  { %203 = vmatpush.xpose.msra.mxu1 %v276_v62 }
  0xea   :  { %204 = vmatpush.xpose.msra.mxu1 %v278_v0 }
  0xee   :  { %205 = vmatpush.xpose.msra.mxu1 %v280_v1 }
  0xf2   :  { %206 = vmatpush.xpose.msra.mxu1 %v282_v2 }
  0xf5   :  { %207 = vmatmul.f32.vlgmr.msra.gmra.mxu1 %v190_v3 }
 0x172   :  { %v208_v4 = vpop.f32.mrf.mxu1 }
 0x173   :  { %211 = vst [vmem:[#allocation2] sm:$0x1] %v208_v4 }
 0x174   :  { %222 = dma.vmem_to_hbm [thread:$0]  %s218_s26, 16, %s220_s29, [#allocation3]  }
 0x175   :  { %307 = dma.done.wait [#allocation3], 16  }
 0x176   :  { %308 = vsyncadd [#allocation3], 4294967280 }
 0x177   :  { %227 = vsyncpa [#allocation3], 1 }

</bundles_post_ra>
